<compile_context>
chip_gen: v6e
topology: v6e:2x2x1
jax: 0.10.0
libtpu: 0.0.40
codegen_flags: <defaults>
</compile_context>

<pallas_src>
import math
import jax
import jax.numpy as jnp
from jax.experimental import pallas as pl
from jax.experimental.pallas import tpu as pltpu


def _round_up(x, m):
    return (x + m - 1) // m * m


def _const_spec(shape, index_map, single_buffer):
    """BlockSpec for a constant-index operand; optionally single-buffered (v7x VMEM headroom)."""
    if single_buffer:
        return pl.BlockSpec(shape, index_map, pipeline_mode=pl.Buffered(1))
    return pl.BlockSpec(shape, index_map)


def _embed_kernel(p_ref, w_ref, pe_ref, out_ref):
    # p_ref: (tn, Kp) operand dtype, w_ref: (Kp, Ep) operand dtype,
    # pe_ref: (tn, Ep) f32, out_ref: (tn, Ep) out dtype.
    acc = jnp.dot(p_ref[...], w_ref[...], preferred_element_type=jnp.float32)  # MXU
    out_ref[...] = (acc + pe_ref[...]).astype(out_ref.dtype)                   # f32 epilogue


def embed_layer(x, conv_w, conv_b, pos_enc, patch_size, *,
                tile_m_cap=512, out_dtype=None, operand_dtype=jnp.bfloat16,
                single_buffer_constants=False, return_padded=False):
    """x: (B, C, H, W).  conv_w: (E, C, p, p), conv_b: (E,), pos_enc: (>=N, E).

    Returns (B, N, E) in `out_dtype` (defaults to x.dtype). Use out_dtype=bf16 to
    halve the dominant HBM (output) stream; use return_padded=True to skip the
    post-kernel slice copy and hand the padded (B, Np, Ep) slab to the consumer.
    """
    B, C, H, W = x.shape
    E = conv_w.shape[0]
    p = patch_size
    Gh, Gw = H // p, W // p
    N = Gh * Gw
    K = C * p * p
    assert pos_enc.shape[0] >= N and pos_enc.shape[1] == E
    out_dtype = x.dtype if out_dtype is None else out_dtype

    Np = _round_up(N, 16)                 # 16-row alignment (bf16 sublane packing)
    Kp = _round_up(K, 128)                # lane-dense contraction dim
    Ep = _round_up(max(E, 128), 128)      # lane-dense output width (== E at prod sizes)

    # ---- host glue: non-overlapping patches in (C, ph, pw) order (Conv2d layout),
    # cast to operand dtype at the boundary, zero-pad N->Np rows and K->Kp lanes.
    patches = x.astype(operand_dtype).reshape(B, C, Gh, p, Gw, p)
    patches = patches.transpose(0, 2, 4, 1, 3, 5).reshape(B, N, K)
    if (Np, Kp) != (N, K):
        patches = jnp.pad(patches, ((0, 0), (0, Np - N), (0, Kp - K)))
    patches = patches.reshape(B * Np, Kp)            # flattened M = B * Np

    # conv weight (E, C, p, p) -> (Kp, Ep); fold the conv bias into the PE table (f32).
    w_mat = conv_w.reshape(E, K).T.astype(operand_dtype)
    if (Kp, Ep) != (K, E):
        w_mat = jnp.pad(w_mat, ((0, Kp - K), (0, Ep - E)))
    pe_bias = pos_enc[:N].astype(jnp.float32) + conv_b[None, :].astype(jnp.float32)
    if (Np, Ep) != (N, E):
        pe_bias = jnp.pad(pe_bias, ((0, Np - N), (0, Ep - E)))

    M = B * Np
    op_b = jnp.dtype(operand_dtype).itemsize
    out_b = jnp.dtype(out_dtype).itemsize

    if Np <= tile_m_cap:
        # ---- Path A: each tile spans k whole batch elements; PE slab is constant.
        min_grid = min(B, 4)              # keep enough steps for pipelining / megacore
        k = 1
        for cand in range(1, B + 1):
            if B % cand:
                continue
            if cand * Np > tile_m_cap or B // cand < min_grid:
                break
            k = cand
        tn = k * Np
        grid = (B // k,)
        pe_tile = jnp.tile(pe_bias, (k, 1)) if k > 1 else pe_bias    # (tn, Ep)
        in_specs = [
            pl.BlockSpec((tn, Kp), lambda i: (i, 0)),                                 # patches
            _const_spec((Kp, Ep), lambda i: (0, 0), single_buffer_constants),         # weight
            _const_spec((tn, Ep), lambda i: (0, 0), single_buffer_constants),         # PE+bias
        ]
        out_spec = pl.BlockSpec((tn, Ep), lambda i: (i, 0))
        dim_sem = ("parallel",)
        pe_hbm_bytes = tn * Ep * 4
    else:
        # ---- Path B: one batch element needs several tiles. B is the innermost
        # grid axis so the PE block index is constant across consecutive steps.
        tn = 16
        for cand in range(min(tile_m_cap, Np), 15, -16):
            if Np % cand == 0:
                tn = cand
                break
        tiles_per_batch = Np // tn
        grid = (tiles_per_batch, B)
        pe_tile = pe_bias                                            # (Np, Ep)
        in_specs = [
            pl.BlockSpec((tn, Kp), lambda i, j: (j * tiles_per_batch + i, 0)),        # patches
            _const_spec((Kp, Ep), lambda i, j: (0, 0), single_buffer_constants),      # weight
            pl.BlockSpec((tn, Ep), lambda i, j: (i, 0)),                              # PE+bias
        ]
        out_spec = pl.BlockSpec((tn, Ep), lambda i, j: (j * tiles_per_batch + i, 0))
        dim_sem = ("parallel", "parallel")
        pe_hbm_bytes = Np * Ep * 4

    # Advisory cost: what actually hits HBM (materialized operand-dtype inputs,
    # PE fetched once per sweep, padded output); post-kernel slice excluded.
    cost = pl.CostEstimate(
        flops=2 * M * Kp * Ep,
        transcendentals=0,
        bytes_accessed=int(M * Kp * op_b + Kp * Ep * op_b + pe_hbm_bytes + M * Ep * out_b),
    )

    # Scoped-VMEM limit from the actual (double-buffered) working set, with slack;
    # v5e's 16 MiB default trips first for large tiles. Capped below v7x's 64 MiB.
    vmem_need = 2 * (tn * Kp * op_b + Kp * Ep * op_b + tn * Ep * 4 + tn * Ep * out_b)
    vmem_limit = int(min(max(2 * vmem_need, 32 * 2 ** 20), 56 * 2 ** 20))

    out = pl.pallas_call(
        _embed_kernel,
        out_shape=jax.ShapeDtypeStruct((M, Ep), out_dtype),
        grid_spec=pltpu.PrefetchScalarGridSpec(
            num_scalar_prefetch=0,
            grid=grid,
            in_specs=in_specs,
            out_specs=out_spec,
        ),
        compiler_params=pltpu.CompilerParams(
            dimension_semantics=dim_sem,
            vmem_limit_bytes=vmem_limit,
        ),
        cost_estimate=cost,
    )(patches, w_mat, pe_tile)

    out = out.reshape(B, Np, Ep)
    if return_padded:
        return out            # let the consumer accept the padded layout (no extra HBM pass)
    return out[:, :N, :E]


def make_positional_encoding(max_seq_len, d_model):
    """Matches PositionalEncoding.__init__ (sin on even dims, cos on odd dims)."""
    position = jnp.arange(max_seq_len, dtype=jnp.float32)[:, None]
    div_term = jnp.exp(jnp.arange(0, d_model, 2, dtype=jnp.float32)
                       * (-math.log(10000.0) / d_model))
    pe = jnp.zeros((max_seq_len, d_model), dtype=jnp.float32)
    pe = pe.at[:, 0::2].set(jnp.sin(position * div_term))
    pe = pe.at[:, 1::2].set(jnp.cos(position * div_term))
    return pe


if __name__ == "__main__":
    # Small shapes consistent with the module: img=16, patch=4, in_c=4, embed=32.
    B, C, img_size, patch_size, E = 2, 4, 16, 4, 32
    Gh = img_size // patch_size
    N = Gh * Gh
    K = C * patch_size * patch_size

    key = jax.random.PRNGKey(0)
    kx, kw, kb = jax.random.split(key, 3)
    x = jax.random.normal(kx, (B, C, img_size, img_size), dtype=jnp.float32)
    conv_w = jax.random.normal(kw, (E, C, patch_size, patch_size),
                               dtype=jnp.float32) * (1.0 / math.sqrt(K))
    conv_b = jax.random.normal(kb, (E,), dtype=jnp.float32) * 0.01
    pos_enc = make_positional_encoding(N, E)                       # (N, E)

    out = jax.block_until_ready(embed_layer(x, conv_w, conv_b, pos_enc, patch_size))
    assert out.shape == (B, N, E)

    # Pure-JAX reference with the same bf16-rounded matmul operands (f32 accumulate).
    patches_ref = x.reshape(B, C, Gh, patch_size, Gh, patch_size)
    patches_ref = patches_ref.transpose(0, 2, 4, 1, 3, 5).reshape(B, N, K)
    p_bf = patches_ref.astype(jnp.bfloat16).astype(jnp.float32)
    w_bf = conv_w.reshape(E, K).T.astype(jnp.bfloat16).astype(jnp.float32)
    ref = jnp.einsum("bnk,ke->bne", p_bf, w_bf) + conv_b[None, None, :] + pos_enc[None, :, :]

    assert jnp.allclose(out, ref, atol=1e-3, rtol=1e-3), "mismatch vs reference"
    print("KERNEL_OK")
</pallas_src>

<mosaic_0001>
module attributes {stable_mosaic.version = 11 : i64} {
  func.func @_embed_kernel(%arg0: i32, %arg1: memref<16x128xbf16, #tpu.memory_space<vmem>>, %arg2: memref<128x128xbf16, #tpu.memory_space<vmem>>, %arg3: memref<16x128xf32, #tpu.memory_space<vmem>>, %arg4: memref<16x128xf32, #tpu.memory_space<vmem>>) attributes {dimension_semantics = [#tpu.dimension_semantics<parallel>], iteration_bounds = array<i64: 2>, scalar_prefetch = 0 : i64, scratch_operands = 0 : i64, tpu.core_type = #tpu.core_type<tc>, window_params = [{transform_indices = @transform_0, window_bounds = array<i64: 16, 128>}, {pipeline_mode = #tpu.pipeline_mode<synchronous>, transform_indices = @transform_1, window_bounds = array<i64: 128, 128>}, {pipeline_mode = #tpu.pipeline_mode<synchronous>, transform_indices = @transform_2, window_bounds = array<i64: 16, 128>}, {transform_indices = @transform_3, window_bounds = array<i64: 16, 128>}]} {
    %c0 = arith.constant 0 : index
    %c0_0 = arith.constant 0 : index
    %0 = vector.load %arg1[%c0, %c0_0] : memref<16x128xbf16, #tpu.memory_space<vmem>>, vector<16x128xbf16>
    %c0_1 = arith.constant 0 : index
    %c0_2 = arith.constant 0 : index
    %1 = vector.load %arg2[%c0_1, %c0_2] : memref<128x128xbf16, #tpu.memory_space<vmem>>, vector<128x128xbf16>
    %cst = arith.constant dense<0.000000e+00> : vector<16x128xf32>
    %2 = tpu.matmul %0, %1, %cst {dimension_numbers = #tpu.dot_dimension_numbers<[1], [0], [0], [1], [0, 0, 1, 1], [], []>} : vector<16x128xbf16>, vector<128x128xbf16>, vector<16x128xf32> -> vector<16x128xf32>
    %c0_3 = arith.constant 0 : index
    %c0_4 = arith.constant 0 : index
    %3 = vector.load %arg3[%c0_3, %c0_4] : memref<16x128xf32, #tpu.memory_space<vmem>>, vector<16x128xf32>
    %4 = arith.addf %2, %3 : vector<16x128xf32>
    %c0_5 = arith.constant 0 : index
    %c0_6 = arith.constant 0 : index
    %5 = vector.load %arg4[%c0_5, %c0_6] : memref<16x128xf32, #tpu.memory_space<vmem>>, vector<16x128xf32>
    tpu.vector_store %arg4[%c0_5, %c0_6], %4 {strides = array<i32>} : memref<16x128xf32, #tpu.memory_space<vmem>>, vector<16x128xf32>,
    return
  }
  func.func @transform_0(%arg0: i32) -> (i32, i32) {
    %c0_i32 = arith.constant 0 : i32
    %c0_i32_0 = arith.constant 0 : i32
    return %arg0, %c0_i32 : i32, i32
  }
  func.func @transform_1(%arg0: i32) -> (i32, i32) {
    %c0_i32 = arith.constant 0 : i32
    %c0_i32_0 = arith.constant 0 : i32
    %c0_i32_1 = arith.constant 0 : i32
    return %c0_i32, %c0_i32_0 : i32, i32
  }
  func.func @transform_2(%arg0: i32) -> (i32, i32) {
    %c0_i32 = arith.constant 0 : i32
    %c0_i32_0 = arith.constant 0 : i32
    %c0_i32_1 = arith.constant 0 : i32
    return %c0_i32, %c0_i32_0 : i32, i32
  }
  func.func @transform_3(%arg0: i32) -> (i32, i32) {
    %c0_i32 = arith.constant 0 : i32
    %c0_i32_0 = arith.constant 0 : i32
    return %arg0, %c0_i32 : i32, i32
  }
}

</mosaic_0001>

<bundles_post_ra>
// kernel: tpu_custom_call.1
= control target key start
LH: loop header
LB: loop body
LE: loop exit
PB: predicated region body
PF: predicated region fallthrough
CT: control target
= control target key end

     0   :  { %8 = vsyncpa [#allocation3], 0  ;;  %s966_s0 = inlined_call_operand.hbm [shape: bf16[32,128], index: 0, kind: input, shape index: {}]   ;;  %s967_s1 = inlined_call_operand.hbm [shape: bf16[128,128], index: 1, kind: input, shape index: {}]   ;;  %s968_s2 = inlined_call_operand.hbm [shape: f32[16,128], index: 2, kind: input, shape index: {}]   ;;  %s969_s3 = inlined_call_operand.hbm [shape: f32[32,128], index: 3, kind: output, shape index: {}]  }
   0x1   :  { %10 = vsyncpa [#allocation3 + $0x1], 0 }
   0x2   :  { %11 = vsyncpa [#allocation6], 0 }
   0x3   :  { %12 = vsyncpa [#allocation4], 0 }
   0x4   :  { %14 = vsyncpa [#allocation4 + $0x1], 0  ;;  %s768_s12 = smov 0   ;;  %s770_s13 = smov 0  }
   0x5   :  { %s772_s14 = smov 0   ;;  %s774_s15 = smov 0  }
   0x6 LB: > { %s789_s16 = sadd.s32 4294967295, %s734_s15   ;;  %s444_s17 = sadd.s32 4294967294, %s734_s15   ;;  %s734_s15 = sphi %s774_s15, %s990_s15   ;;  %s730_s14 = sphi %s772_s14, %s989_s14   ;;  %s726_s13 = sphi %s770_s13, %s988_s13   ;;  %s722_s12 = sphi %s768_s12, %s987_s12  }
   0x7   : > { %p40_p0 = scmp.ne.s32.totalorder %s726_s13, %s722_s12  ;;  %p970_p1 = scmp.eq.s32.totalorder %s789_s16, 0 }
   0x8   : > { %p106_p2 = scmp.eq.s32.totalorder %s789_s16, 1  ;;  %p112_p3 = scmp.eq.s32.totalorder %s444_s17, 1 }
   0x9   : > { %p798_p4 = por %p970_p1, %p40_p0  ;;  %p445_p5 = scmp.ge.s32.totalorder %s734_s15, 1 }
   0xa   : > { %p803_p6 = por %p112_p3, %p40_p0  ;;  %p119_p7 = scmp.lt.s32.totalorder %s734_s15, 3 }
   0xb   : > { %s974_s18 = scalar_select %p798_p4, 1, 0 }
   0xc   : > { %s975_s19 = scalar_select %p803_p6, 1, 0 }
   0xd   : > { %p808_p8 = pnand %p445_p5, %p119_p7  ;;  %s736_s21 = smov [#allocation5]  }
   0xe   : > { %s131_s22 = sshll.u32 %s736_s21, 4  ;;  %s737_s24 = smov [#allocation7]   ;;  %s132_s22 = int_to_ptr.vmem [resolvable:$true] %s131_s22 }
   0xf   : > { %s976_s20 = scalar_select %p808_p8, 1, 0 }
  0x10   : > { %p514_p9 = pneg %p808_p8  ;;  %s144_s25 = sshll.u32 %s737_s24, 4  ;;  %s145_s25 = int_to_ptr.vmem [resolvable:$true] %s144_s25 }
  0x11   : > { %s597_s26 = scalar_lea.vmem %s132_s22, 1024  ;;  %p605_p5 = scmp.lt.s32.totalorder %s132_s22, %s132_s22 }
  0x12   : > { %p817_p11 = pnand %p514_p9, %p970_p1  ;;  %p598_p13 = scmp.ne.s32.totalorder %s132_s22, %s597_s26 }
  0x13   : > { %p606_p7 = scmp.lt.s32.totalorder %s597_s26, %s597_s26 }
  0x14   : > { %p588_p12 = pneg %p817_p11 }
  0x15   : > { %p607_p10 = por %p606_p7, %p605_p5 }
  0x16   : > { %p600_p0 = pnand %p598_p13, %p588_p12 }
  0x18   : > { %p601_p3 = pneg %p600_p0 }
  0x1a   : > { %p608_p9 = pnand %p607_p10, %p601_p3 }
  0x1c   : > { %611 = shalt.err (!%p608_p9)
}
  0x1d   : > { %s738_s27 = smov 64   ;;  %s739_s28 = smov 4  }
  0x1e   : > { %517 = dma.hbm_to_vmem [thread:$0]  (!%p817_p11), %s967_s1, 1024, %s132_s22, [#allocation6], %s738_s27, %s738_s27, %s739_s28  }
  0x1f   : > { %s623_s4 = scalar_lea.vmem %s145_s25, 256  ;;  %p631_p10 = scmp.lt.s32.totalorder %s145_s25, %s145_s25 }
  0x20   : > { %p624_p13 = scmp.ne.s32.totalorder %s145_s25, %s623_s4  ;;  %p632_p3 = scmp.lt.s32.totalorder %s623_s4, %s623_s4 }
  0x22   : > { %p626_p0 = pnand %p624_p13, %p588_p12  ;;  %p633_p7 = por %p632_p3, %p631_p10 }
  0x24   : > { %p627_p5 = pneg %p626_p0 }
  0x26   : > { %p634_p9 = pnand %p633_p7, %p627_p5 }
  0x28   : > { %637 = shalt.err (!%p634_p9)
}
  0x29   : > { %s740_s5 = smov 128   ;;  %s741_s6 = smov 8  }
  0x2a   : > { %520 = dma.hbm_to_vmem [thread:$0]  (!%p817_p11), %s968_s2, 256, %s145_s25, [#allocation6], %s740_s5, %s740_s5, %s741_s6  }
  0x2b   : > { %s843_s9 = sadd.s32 1, %s734_s15   ;;  %s27_s11 = sadd.s32 1, %s730_s14 }
  0x2c   : > { %s24_s10 = ssub.s32 %s734_s15, %s843_s9  ;;  %p34_p13 = scmp.ne.s32.totalorder %s730_s14, %s726_s13 }
  0x2d   : > { %p25_p12 = scmp.eq.s32.totalorder %s24_s10, 0  ;;  %p35_p0 = scmp.eq.s32.totalorder %s734_s15, 0 }
  0x2e   : > { %p856_p10 = por %p106_p2, %p34_p13  ;;  %p531_p3 = scmp.lt.s32.totalorder %s734_s15, 2 }
  0x2f   : > { %s852_s17 = scalar_select %p25_p12, %s730_s14, %s27_s11  }
  0x30   : > { %p36_p5 = por %p35_p0, %p34_p13  ;;  %s158_s22 = sand.u32 1, %s730_s14  }
  0x31   : > { %s978_s21 = scalar_select %p856_p10, 1, 0 }
  0x32   : > { %s449_s23 = sshll.u32 %s158_s22, 3  ;;  %s471_s24 = sshll.u32 %s734_s15, 7 }
  0x33   : > { %s866_s29 = scalar_lea.hbm %s966_s0, %s471_s24  ;;  %s162_s30 = scalar_lea.vmem [#allocation2], %s449_s23 }
  0x34   : > { %s169_s4 = sshll.u32 %s162_s30, 4  ;;  %p870_p2 = pnand %p531_p3, %p36_p5  ;;  %s868_s4 = int_to_ptr.vmem [resolvable:$true] %s169_s4 }
  0x35   : > { %s874_s6 = scalar_lea.sflag [#allocation3], %s158_s22  ;;  %s638_s7 = scalar_lea.hbm %s866_s29, 128 }
  0x36   : > { %p639_p11 = scmp.ne.s32.totalorder %s866_s29, %s638_s7  ;;  %p640_p7 = pneg %p870_p2 }
  0x37   : > { %s643_s11 = scalar_lea.hbm %s966_s0, 256  ;;  %p644_p13 = scmp.lt.s32.totalorder %s866_s29, %s966_s0 }
  0x38   : > { %p641_p9 = pnand %p640_p7, %p639_p11  ;;  %p645_p0 = scmp.lt.s32.totalorder %s643_s11, %s638_s7 }
  0x3a   : > { %p642_p12 = pneg %p641_p9  ;;  %p646_p5 = por %p645_p0, %p644_p13 }
  0x3c   : > { %p647_p3 = pnand %p646_p5, %p642_p12 }
  0x3e   : > { %650 = shalt.err (!%p647_p3)
}
  0x3f   : > { %s651_s22 = scalar_lea.vmem %s868_s4, 128  ;;  %s742_s25 = smov [#allocation2]  }
  0x40   : > { %p652_p1 = scmp.ne.s32.totalorder %s868_s4, %s651_s22  ;;  %s656_s26 = sshll.u32 %s742_s25, 4  ;;  %s657_s26 = int_to_ptr.vmem [resolvable:$false] %s656_s26 }
  0x41   : > { %s658_s30 = scalar_lea.vmem %s657_s26, 256  ;;  %p659_p9 = scmp.lt.s32.totalorder %s868_s4, %s657_s26 }
  0x42   : > { %p654_p6 = pnand %p652_p1, %p640_p7  ;;  %p660_p10 = scmp.lt.s32.totalorder %s658_s30, %s651_s22 }
  0x44   : > { %p655_p11 = pneg %p654_p6  ;;  %p661_p4 = por %p660_p10, %p659_p9 }
  0x46   : > { %p662_p8 = pnand %p661_p4, %p655_p11 }
  0x48   : > { %665 = shalt.err (!%p662_p8)
}
  0x49   : > { %524 = dma.hbm_to_vmem [thread:$0]  (!%p870_p2), %s866_s29, 128, %s868_s4, %s874_s6, %s738_s27, %s738_s27, %s739_s28  }
  0x4a   : > { %p980_p1 = scmp.ne.s32.totalorder %s976_s20, 0 }
  0x4b   : > { %s901_s7 = sand.u32 (!%p980_p1), 1, %s726_s13   ;;  %p981_p4 = scmp.ne.s32.totalorder (!%p980_p1), %s974_s18, 0 }
  0x4c   : > { %181 = sbr.rel (%p980_p1) target bundleno = 331 (0x14b), region = 32  ;;  %s453_s8 = sshll.u32 (!%p980_p1), %s901_s7, 3 }
  0x4d   : > { %s184_s10 = scalar_lea.sflag (!%p980_p1), [#allocation3], %s901_s7  ;;  %s905_s11 = scalar_lea.vmem (!%p980_p1), [#allocation2], %s453_s8 }
  0x51   : > { %709 = dma.done.wait (%p981_p4), %s184_s10, 128  }
  0x52   : > { %711 = vsyncadd (%p981_p4), %s184_s10, 4294967168  ;;  %p982_p6 = scmp.eq.s32.totalorder %s789_s16, 0 }
  0x54   : > { %713 = dma.done.wait (%p982_p6), [#allocation6], 1280   ;;  %p983_p8 = pmov %p982_p6 }
  0x55   : > { %v743_v0 = vmov 0.0   ;;  %vm744_vm0 = vmmov 0   ;;  %v577_v1 = vld [vmem:[#allocation5 + $0x38] sm:$0xff]   ;;  %v578_v2 = vld [vmem:[#allocation5 + $0x30] sm:$0xff]   ;;  %v579_v3 = vld [vmem:[#allocation5 + $0x28] sm:$0xff]   ;;  %s456_s18 = sshll.u32 %s901_s7, 4 }
  0x56   : > { %715 = vsyncadd (%p983_p8), [#allocation6], 4294966016  ;;  %482 = vmatprep.subr.bf16.mxu0 %v743_v0  ;;  %498 = vmatprep.mubr.msk.bf16.mxu0 %vm744_vm0, %v743_v0  ;;  %v580_v4 = vld [vmem:[#allocation5 + $0x20] sm:$0xff]   ;;  %v581_v5 = vld [vmem:[#allocation5 + $0x18] sm:$0xff]   ;;  %s217_s20 = scalar_lea.vmem [#allocation8], %s456_s18  ;;  %s472_s28 = sshll.u32 %s789_s16, 8 }
  0x57   : > { %483 = vmatpush3.bf16.msra.mxu0 %v577_v1  ;;  %v582_v6 = vld [vmem:[#allocation5 + $0x10] sm:$0xff]   ;;  %v583_v7 = vld [vmem:[#allocation5 + $0x8] sm:$0xff]   ;;  %v584_v8 = vld [vmem:[#allocation5] sm:$0xff]   ;;  %s352_s27 = sshll.u32 %s217_s20, 4  ;;  %s923_s5 = scalar_lea.hbm %s969_s3, %s472_s28  ;;  %s918_s27 = int_to_ptr.vmem [resolvable:$true] %s352_s27 }
  0x58   : > { %484 = vmatprep.subr.bf16.mxu0 %v743_v0  ;;  %v585_v9 = vld [vmem:[%s905_s11] sm:$0xff]   ;;  %v239_v10 = vld [vmem:[#allocation7] sm:$0xff]  ;;  %v240_v14 = vld [vmem:[#allocation7 + $0x8] sm:$0xff]  ;;  %s339_s6 = scalar_lea.sflag [#allocation4], %s901_s7  ;;  %s666_s23 = scalar_lea.vmem %s918_s27, 256 }
  0x59   : > { %p667_p10 = scmp.ne.s32.totalorder %s918_s27, %s666_s23  ;;  %p984_p2 = scmp.ne.s32.totalorder %s978_s21, 0 }
  0x5a   : > { %s745_s16 = smov [#allocation8]  }
  0x5b   : > { %485 = vmatpush3.bf16.msra.mxu0 %v578_v2  ;;  %p668_p7 = pnand %p667_p10, %p984_p2  ;;  %s670_s24 = sshll.u32 %s745_s16, 4  ;;  %s671_s24 = int_to_ptr.vmem [resolvable:$false] %s670_s24 }
  0x5c   : > { %486 = vmatprep.subr.bf16.mxu0 %v743_v0  ;;  %s672_s22 = scalar_lea.vmem %s671_s24, 512  ;;  %p673_p13 = scmp.lt.s32.totalorder %s918_s27, %s671_s24 }
  0x5d   : > { %p669_p12 = pneg %p668_p7  ;;  %p674_p0 = scmp.lt.s32.totalorder %s672_s22, %s666_s23 }
  0x5f   : > { %487 = vmatpush3.bf16.msra.mxu0 %v579_v3  ;;  %p675_p5 = por %p674_p0, %p673_p13 }
  0x60   : > { %488 = vmatprep.subr.bf16.mxu0 %v743_v0 }
  0x61   : > { %p676_p3 = pnand %p675_p5, %p669_p12 }
  0x63   : > { %489 = vmatpush3.bf16.msra.mxu0 %v580_v4 }
  0x64   : > { %490 = vmatprep.subr.bf16.mxu0 %v743_v0 }
  0x67   : > { %491 = vmatpush3.bf16.msra.mxu0 %v581_v5 }
  0x68   : > { %492 = vmatprep.subr.bf16.mxu0 %v743_v0 }
  0x6b   : > { %493 = vmatpush3.bf16.msra.mxu0 %v582_v6 }
  0x6c   : > { %494 = vmatprep.subr.bf16.mxu0 %v743_v0 }
  0x6f   : > { %495 = vmatpush3.bf16.msra.mxu0 %v583_v7 }
  0x70   : > { %496 = vmatprep.subr.bf16.mxu0 %v743_v0 }
  0x73   : > { %497 = vmatpush3.bf16.msra.mxu0 %v584_v8 }
  0x76   : > { %499 = vmatmul.mubr.bf16.vlgmr.msra.gmra.mxu0 %v585_v9 }
 0x136   : > { %v329_v11 = vpop.f32.mrf.mxu0 }
 0x137   : > { %v330_v12 = vadd.f32 %v329_v11, %v239_v10 }
 0x138   : > { %v500_v13 = vpop.f32.mrf.mxu0 }
 0x139   : > { %336 = vst [vmem:[%s217_s20] sm:$0xff] %v330_v12 }
 0x13a   : > { %v332_v15 = vpop.f32.mrf.mxu0 }
 0x13b   : > { %v333_v16 = vadd.f32 %v332_v15, %v240_v14 }
 0x13c   : > { %v501_v17 = vpop.f32.mrf.mxu0 }
 0x13d   : > { %337 = vst [vmem:[%s217_s20 + $0x8] sm:$0xff] %v333_v16 }
 0x13e   : > { %679 = shalt.err (!%p676_p3)
}
 0x13f   : > { %s680_s25 = scalar_lea.hbm %s923_s5, 256  ;;  %s684_s8 = scalar_lea.hbm %s969_s3, 512 }
 0x140   : > { %p681_p11 = scmp.ne.s32.totalorder %s923_s5, %s680_s25  ;;  %p685_p4 = scmp.lt.s32.totalorder %s923_s5, %s969_s3 }
 0x141   : > { %p686_p6 = scmp.lt.s32.totalorder %s684_s8, %s680_s25 }
 0x142   : > { %p682_p9 = pnand %p681_p11, %p984_p2 }
 0x143   : > { %p687_p8 = por %p686_p6, %p685_p4 }
 0x144   : > { %p683_p1 = pneg %p682_p9 }
 0x146   : > { %p688_p10 = pnand %p687_p8, %p683_p1 }
 0x148   : > { %691 = shalt.err (!%p688_p10)
}
 0x149   : > { %s746_s18 = smov 128   ;;  %s747_s20 = smov 8  }
 0x14a   : > { %512 = dma.vmem_to_hbm [thread:$0]  (%p984_p2), %s918_s27, 256, %s923_s5, %s339_s6, %s746_s18, %s746_s18, %s747_s20  }
 0x14b PF: > { %s367_s28 = sand.u32 1, %s722_s12   ;;  %p985_p7 = scmp.ne.s32.totalorder %s975_s19, 0 }
 0x14c   : > { %p986_p12 = scmp.ge.s32.totalorder %s734_s15, 2  ;;  %s368_s29 = scalar_lea.sflag [#allocation4], %s367_s28 }
 0x14e   : > { %p526_p13 = pnand %p986_p12, %p985_p7 }
 0x150   : > { %p527_p0 = pneg %p526_p13 }
 0x152   : > { %717 = dma.done.wait (%p527_p0), %s368_s29, 256  }
 0x153   : > { %719 = vsyncadd (%p527_p0), %s368_s29, 4294967040  ;;  %p17_p5 = scmp.ge.s32.totalorder %s843_s9, 4   ;;  %s987_s12 = smov %s726_s13 }
 0x154   : > { %s988_s13 = smov %s730_s14  ;;  %s989_s14 = smov %s852_s17 }
 0x155   : > { %s990_s15 = smov %s843_s9  ;;  %19 = sbr.rel (!%p17_p5) target bundleno = 6 (0x6), region = 85 }
 0x15a   :  { %373 = vsyncpa [#allocation3], 1 }
 0x15b   :  { %375 = vsyncpa [#allocation3 + $0x1], 1 }
 0x15c   :  { %376 = vsyncpa [#allocation6], 1 }
 0x15d   :  { %377 = vsyncpa [#allocation4], 1 }
 0x15e   :  { %379 = vsyncpa [#allocation4 + $0x1], 1 }

</bundles_post_ra>
